<compile_context>
chip_gen: v7x
topology: tpu7x:2x2x1
jax: 0.10.0
libtpu: 0.0.40
codegen_flags: <defaults>
</compile_context>

<pallas_src>
import jax
import jax.numpy as jnp
from jax.experimental import pallas as pl
from jax.experimental.pallas import tpu as pltpu

_LANE = 128
_SUBLANE = 8


def _round_up(n: int, m: int) -> int:
    return ((n + m - 1) // m) * m


def _default_batch_tile() -> int:
    # 256 rows matches the v6e/v7x 256x256 MXU; v5e's MXU is 128x128, so a
    # 128-row LHS tile already saturates it and 256 only raises VMEM pressure.
    try:
        kind = jax.devices()[0].device_kind.lower()
        if "v5 lite" in kind or "v5e" in kind or "v5litepod" in kind:
            return 128
    except Exception:
        pass
    return 256


def ffn_kernel(x_ref, w1_ref, b1_ref, w2_ref, b2_ref, o_ref):
    # MXU matmul #1 (bf16 inputs, f32 accumulation) + f32 VPU bias/ReLU.
    h = jnp.dot(x_ref[...], w1_ref[...], preferred_element_type=jnp.float32)
    h = jnp.maximum(h + b1_ref[...], 0.0)
    # MXU matmul #2, then f32 bias add + EUP sigmoid; single cast at the
    # lane-dense output store.
    y = jnp.dot(h.astype(w2_ref.dtype), w2_ref[...],
                preferred_element_type=jnp.float32)
    o_ref[...] = jax.nn.sigmoid(y + b2_ref[...]).astype(o_ref.dtype)


def _build_call(batch_tile, B_p, In_p, H_p, Out_p, compute_dtype, out_dtype,
                weight_buffers):
    grid = (B_p // batch_tile,)

    # Resident operands (constant index_map): weights + biases.
    resident_kwargs = {}
    if weight_buffers == 1:
        resident_kwargs = dict(pipeline_mode=pl.Buffered(1))

    in_specs = [
        pl.BlockSpec((batch_tile, In_p), lambda i: (i, 0)),               # x tile
        pl.BlockSpec((In_p, H_p), lambda i: (0, 0), **resident_kwargs),   # W1
        pl.BlockSpec((1, H_p), lambda i: (0, 0), **resident_kwargs),      # b1 (f32)
        pl.BlockSpec((H_p, Out_p), lambda i: (0, 0), **resident_kwargs),  # W2
        pl.BlockSpec((1, Out_p), lambda i: (0, 0), **resident_kwargs),    # b2 (f32)
    ]
    out_specs = pl.BlockSpec((batch_tile, Out_p), lambda i: (i, 0))

    # Explicit VMEM budget: double-buffered streaming tiles + resident weights.
    cbytes = jnp.dtype(compute_dtype).itemsize
    obytes = jnp.dtype(out_dtype).itemsize
    need = (2 * batch_tile * In_p * cbytes
            + 2 * batch_tile * Out_p * obytes
            + weight_buffers * (In_p * H_p + H_p * Out_p) * cbytes
            + weight_buffers * (H_p + Out_p) * 4
            + batch_tile * H_p * 4)                       # f32 hidden activation
    vmem_limit = int(min(max(2 * need + (4 << 20), 32 << 20), 64 << 20))

    cost = pl.CostEstimate(
        flops=2 * B_p * In_p * H_p + 2 * B_p * H_p * Out_p,
        transcendentals=B_p * Out_p,                      # sigmoid exp
        bytes_accessed=(B_p * In_p * cbytes + B_p * Out_p * obytes
                        + (In_p * H_p + H_p * Out_p) * cbytes
                        + (H_p + Out_p) * 4),
    )

    return pl.pallas_call(
        ffn_kernel,
        out_shape=jax.ShapeDtypeStruct((B_p, Out_p), out_dtype),
        grid_spec=pltpu.PrefetchScalarGridSpec(
            num_scalar_prefetch=0,
            grid=grid,
            in_specs=in_specs,
            out_specs=out_specs,
        ),
        compiler_params=pltpu.CompilerParams(
            dimension_semantics=("parallel",),   # batch tiles are independent
            vmem_limit_bytes=vmem_limit,
        ),
        cost_estimate=cost,
    )


def ffn_forward(x, w1, b1, w2, b2, *, batch_tile=None,
                compute_dtype=jnp.bfloat16):
    """sigmoid(relu(x @ w1 + b1) @ w2 + b2).

    x : (B, In);  w1 : (In, H);  b1 : (H,) or (1, H);
                  w2 : (H, Out); b2 : (Out,) or (1, Out).
    Weights are stored transposed vs. torch.nn.Linear, so the kernel computes
    y = x @ W + b (identical math to PyTorch's x @ W.T + b).
    """
    B, In = x.shape
    H = w1.shape[1]
    Out = w2.shape[1]
    out_dtype = x.dtype

    # Lane-dense padding: feature dims up to multiples of 128 lanes.
    In_p, H_p, Out_p = (_round_up(d, _LANE) for d in (In, H, Out))

    # Batch tile: multiple of 8 sublanes, capped by the (padded) batch.
    if batch_tile is None:
        batch_tile = _default_batch_tile()
    batch_tile = _round_up(max(_SUBLANE, min(batch_tile, _round_up(B, _SUBLANE))),
                           _SUBLANE)
    B_p = _round_up(B, batch_tile)

    # Zero padding is an exact no-op through both matmuls / bias adds;
    # padded output rows/cols are sliced off below (handles ragged B too).
    x_p = jnp.pad(x.astype(compute_dtype), ((0, B_p - B), (0, In_p - In)))
    w1_p = jnp.pad(w1.astype(compute_dtype), ((0, In_p - In), (0, H_p - H)))
    w2_p = jnp.pad(w2.astype(compute_dtype), ((0, H_p - H), (0, Out_p - Out)))
    b1_p = jnp.pad(b1.astype(jnp.float32).reshape(1, H),
                   ((0, 0), (0, H_p - H)))
    b2_p = jnp.pad(b2.astype(jnp.float32).reshape(1, Out),
                   ((0, 0), (0, Out_p - Out)))

    out_p = None
    # Prefer single-buffered resident weights (halves weight VMEM on v7x);
    # fall back to default double-buffering if pl.Buffered(1) is not supported
    # for the top-level pipeline by this Pallas/Mosaic version.
    for weight_buffers in (1, 2):
        try:
            call = _build_call(batch_tile, B_p, In_p, H_p, Out_p,
                               compute_dtype, out_dtype, weight_buffers)
            out_p = call(x_p, w1_p, b1_p, w2_p, b2_p)
            break
        except Exception:
            if weight_buffers == 2:
                raise
    return out_p[:B, :Out]


def _ffn_reference(x, w1, b1, w2, b2, compute_dtype=None):
    if compute_dtype is not None:
        h = jnp.dot(x.astype(compute_dtype), w1.astype(compute_dtype),
                    preferred_element_type=jnp.float32)
        h = jnp.maximum(h + b1.astype(jnp.float32), 0.0)
        y = jnp.dot(h.astype(compute_dtype), w2.astype(compute_dtype),
                    preferred_element_type=jnp.float32) + b2.astype(jnp.float32)
        return jax.nn.sigmoid(y)
    return jax.nn.sigmoid(jnp.maximum(x @ w1 + b1, 0.0) @ w2 + b2)


if __name__ == "__main__":
    # FFN(input_size=32, hidden_size=64, output_size=16)
    input_size, hidden_size, output_size = 32, 64, 16

    key = jax.random.PRNGKey(0)
    kx, kw1, kb1, kw2, kb2 = jax.random.split(key, 5)

    w1 = jax.random.normal(kw1, (input_size, hidden_size), jnp.float32) * 0.1
    b1 = jax.random.normal(kb1, (1, hidden_size), jnp.float32) * 0.1
    w2 = jax.random.normal(kw2, (hidden_size, output_size), jnp.float32) * 0.1
    b2 = jax.random.normal(kb2, (1, output_size), jnp.float32) * 0.1

    # Two batch sizes: a tiny one (single grid step) and a ragged one that
    # exercises padding plus a multi-step, megacore-shardable grid.
    for batch in (8, 300):
        x = jax.random.normal(kx, (batch, input_size), jnp.float32)
        out = ffn_forward(x, w1, b1, w2, b2)
        jax.block_until_ready(out)
        assert out.shape == (batch, output_size)

        # Same-precision (bf16 matmul, f32 epilogue) reference: tight check.
        ref_bf16 = _ffn_reference(x, w1, b1, w2, b2,
                                  compute_dtype=jnp.bfloat16)
        # Pure-f32 reference: loose check (bf16 matmul quantization).
        ref_f32 = _ffn_reference(x, w1, b1, w2, b2)
        assert jnp.allclose(out, ref_bf16, atol=2e-3, rtol=2e-3), \
            float(jnp.max(jnp.abs(out - ref_bf16)))
        assert jnp.allclose(out, ref_f32, atol=2e-2, rtol=2e-2), \
            float(jnp.max(jnp.abs(out - ref_f32)))

    print("KERNEL_OK")
</pallas_src>

<mosaic_0001>
module attributes {stable_mosaic.version = 11 : i64} {
  func.func @ffn_kernel(%arg0: i32, %arg1: memref<8x128xbf16, #tpu.memory_space<vmem>>, %arg2: memref<128x128xbf16, #tpu.memory_space<vmem>>, %arg3: memref<1x128xf32, #tpu.memory_space<vmem>>, %arg4: memref<128x128xbf16, #tpu.memory_space<vmem>>, %arg5: memref<1x128xf32, #tpu.memory_space<vmem>>, %arg6: memref<8x128xf32, #tpu.memory_space<vmem>>) attributes {dimension_semantics = [#tpu.dimension_semantics<parallel>], iteration_bounds = array<i64: 1>, scalar_prefetch = 0 : i64, scratch_operands = 0 : i64, tpu.core_type = #tpu.core_type<tc>, window_params = [{transform_indices = @transform_0, window_bounds = array<i64: 8, 128>}, {pipeline_mode = #tpu.pipeline_mode<synchronous>, transform_indices = @transform_1, window_bounds = array<i64: 128, 128>}, {pipeline_mode = #tpu.pipeline_mode<synchronous>, transform_indices = @transform_2, window_bounds = array<i64: 1, 128>}, {pipeline_mode = #tpu.pipeline_mode<synchronous>, transform_indices = @transform_3, window_bounds = array<i64: 128, 128>}, {pipeline_mode = #tpu.pipeline_mode<synchronous>, transform_indices = @transform_4, window_bounds = array<i64: 1, 128>}, {transform_indices = @transform_5, window_bounds = array<i64: 8, 128>}]} {
    %c0 = arith.constant 0 : index
    %c0_0 = arith.constant 0 : index
    %0 = vector.load %arg1[%c0, %c0_0] : memref<8x128xbf16, #tpu.memory_space<vmem>>, vector<8x128xbf16>
    %c0_1 = arith.constant 0 : index
    %c0_2 = arith.constant 0 : index
    %1 = vector.load %arg2[%c0_1, %c0_2] : memref<128x128xbf16, #tpu.memory_space<vmem>>, vector<128x128xbf16>
    %cst = arith.constant dense<0.000000e+00> : vector<8x128xf32>
    %2 = tpu.matmul %0, %1, %cst {dimension_numbers = #tpu.dot_dimension_numbers<[1], [0], [0], [1], [0, 0, 1, 1], [], []>} : vector<8x128xbf16>, vector<128x128xbf16>, vector<8x128xf32> -> vector<8x128xf32>
    %c0_3 = arith.constant 0 : index
    %c0_4 = arith.constant 0 : index
    %3 = vector.load %arg3[%c0_3, %c0_4] : memref<1x128xf32, #tpu.memory_space<vmem>>, vector<1x128xf32>
    %4 = vector.broadcast %3 : vector<1x128xf32> to vector<8x128xf32>
    %5 = arith.addf %2, %4 : vector<8x128xf32>
    %cst_5 = arith.constant 0.000000e+00 : f32
    %6 = vector.broadcast %cst_5 : f32 to vector<8x128xf32>
    %7 = arith.maximumf %5, %6 : vector<8x128xf32>
    %8 = arith.truncf %7 : vector<8x128xf32> to vector<8x128xbf16>
    %c0_6 = arith.constant 0 : index
    %c0_7 = arith.constant 0 : index
    %9 = vector.load %arg4[%c0_6, %c0_7] : memref<128x128xbf16, #tpu.memory_space<vmem>>, vector<128x128xbf16>
    %cst_8 = arith.constant dense<0.000000e+00> : vector<8x128xf32>
    %10 = tpu.matmul %8, %9, %cst_8 {dimension_numbers = #tpu.dot_dimension_numbers<[1], [0], [0], [1], [0, 0, 1, 1], [], []>} : vector<8x128xbf16>, vector<128x128xbf16>, vector<8x128xf32> -> vector<8x128xf32>
    %c0_9 = arith.constant 0 : index
    %c0_10 = arith.constant 0 : index
    %11 = vector.load %arg5[%c0_9, %c0_10] : memref<1x128xf32, #tpu.memory_space<vmem>>, vector<1x128xf32>
    %12 = vector.broadcast %11 : vector<1x128xf32> to vector<8x128xf32>
    %13 = arith.addf %10, %12 : vector<8x128xf32>
    %14 = arith.negf %13 : vector<8x128xf32>
    %15 = math.exp %14 : vector<8x128xf32>
    %cst_11 = arith.constant 1.000000e+00 : f32
    %16 = vector.broadcast %cst_11 : f32 to vector<8x128xf32>
    %17 = arith.addf %16, %15 : vector<8x128xf32>
    %18 = arith.divf %16, %17 : vector<8x128xf32>
    %c0_12 = arith.constant 0 : index
    %c0_13 = arith.constant 0 : index
    %19 = vector.load %arg6[%c0_12, %c0_13] : memref<8x128xf32, #tpu.memory_space<vmem>>, vector<8x128xf32>
    tpu.vector_store %arg6[%c0_12, %c0_13], %18 {strides = array<i32>} : memref<8x128xf32, #tpu.memory_space<vmem>>, vector<8x128xf32>,
    return
  }
  func.func @transform_0(%arg0: i32) -> (i32, i32) {
    %c0_i32 = arith.constant 0 : i32
    %c0_i32_0 = arith.constant 0 : i32
    return %arg0, %c0_i32 : i32, i32
  }
  func.func @transform_1(%arg0: i32) -> (i32, i32) {
    %c0_i32 = arith.constant 0 : i32
    %c0_i32_0 = arith.constant 0 : i32
    %c0_i32_1 = arith.constant 0 : i32
    return %c0_i32, %c0_i32_0 : i32, i32
  }
  func.func @transform_2(%arg0: i32) -> (i32, i32) {
    %c0_i32 = arith.constant 0 : i32
    %c0_i32_0 = arith.constant 0 : i32
    %c0_i32_1 = arith.constant 0 : i32
    return %c0_i32, %c0_i32_0 : i32, i32
  }
  func.func @transform_3(%arg0: i32) -> (i32, i32) {
    %c0_i32 = arith.constant 0 : i32
    %c0_i32_0 = arith.constant 0 : i32
    %c0_i32_1 = arith.constant 0 : i32
    return %c0_i32, %c0_i32_0 : i32, i32
  }
  func.func @transform_4(%arg0: i32) -> (i32, i32) {
    %c0_i32 = arith.constant 0 : i32
    %c0_i32_0 = arith.constant 0 : i32
    %c0_i32_1 = arith.constant 0 : i32
    return %c0_i32, %c0_i32_0 : i32, i32
  }
  func.func @transform_5(%arg0: i32) -> (i32, i32) {
    %c0_i32 = arith.constant 0 : i32
    %c0_i32_0 = arith.constant 0 : i32
    return %arg0, %c0_i32 : i32, i32
  }
}

module attributes {stable_mosaic.version = 11 : i64} {
  func.func @ffn_kernel(%arg0: i32, %arg1: memref<8x128xbf16, #tpu.memory_space<vmem>>, %arg2: memref<128x128xbf16, #tpu.memory_space<vmem>>, %arg3: memref<1x128xf32, #tpu.memory_space<vmem>>, %arg4: memref<128x128xbf16, #tpu.memory_space<vmem>>, %arg5: memref<1x128xf32, #tpu.memory_space<vmem>>, %arg6: memref<8x128xf32, #tpu.memory_space<vmem>>) attributes {dimension_semantics = [#tpu.dimension_semantics<parallel>], iteration_bounds = array<i64: 1>, scalar_prefetch = 0 : i64, scratch_operands = 0 : i64, tpu.core_type = #tpu.core_type<tc>, window_params = [{transform_indices = @transform_0, window_bounds = array<i64: 8, 128>}, {pipeline_mode = #tpu.pipeline_mode<synchronous>, transform_indices = @transform_1, window_bounds = array<i64: 128, 128>}, {pipeline_mode = #tpu.pipeline_mode<synchronous>, transform_indices = @transform_2, window_bounds = array<i64: 1, 128>}, {pipeline_mode = #tpu.pipeline_mode<synchronous>, transform_indices = @transform_3, window_bounds = array<i64: 128, 128>}, {pipeline_mode = #tpu.pipeline_mode<synchronous>, transform_indices = @transform_4, window_bounds = array<i64: 1, 128>}, {transform_indices = @transform_5, window_bounds = array<i64: 8, 128>}]} {
    %c0 = arith.constant 0 : index
    %c0_0 = arith.constant 0 : index
    %0 = vector.load %arg1[%c0, %c0_0] : memref<8x128xbf16, #tpu.memory_space<vmem>>, vector<8x128xbf16>
    %c0_1 = arith.constant 0 : index
    %c0_2 = arith.constant 0 : index
    %1 = vector.load %arg2[%c0_1, %c0_2] : memref<128x128xbf16, #tpu.memory_space<vmem>>, vector<128x128xbf16>
    %cst = arith.constant dense<0.000000e+00> : vector<8x128xf32>
    %2 = tpu.matmul %0, %1, %cst {dimension_numbers = #tpu.dot_dimension_numbers<[1], [0], [0], [1], [0, 0, 1, 1], [], []>} : vector<8x128xbf16>, vector<128x128xbf16>, vector<8x128xf32> -> vector<8x128xf32>
    %c0_3 = arith.constant 0 : index
    %c0_4 = arith.constant 0 : index
    %3 = vector.load %arg3[%c0_3, %c0_4] : memref<1x128xf32, #tpu.memory_space<vmem>>, vector<1x128xf32>
    %4 = vector.broadcast %3 : vector<1x128xf32> to vector<8x128xf32>
    %5 = arith.addf %2, %4 : vector<8x128xf32>
    %cst_5 = arith.constant 0.000000e+00 : f32
    %6 = vector.broadcast %cst_5 : f32 to vector<8x128xf32>
    %7 = arith.maximumf %5, %6 : vector<8x128xf32>
    %8 = arith.truncf %7 : vector<8x128xf32> to vector<8x128xbf16>
    %c0_6 = arith.constant 0 : index
    %c0_7 = arith.constant 0 : index
    %9 = vector.load %arg4[%c0_6, %c0_7] : memref<128x128xbf16, #tpu.memory_space<vmem>>, vector<128x128xbf16>
    %cst_8 = arith.constant dense<0.000000e+00> : vector<8x128xf32>
    %10 = tpu.matmul %8, %9, %cst_8 {dimension_numbers = #tpu.dot_dimension_numbers<[1], [0], [0], [1], [0, 0, 1, 1], [], []>} : vector<8x128xbf16>, vector<128x128xbf16>, vector<8x128xf32> -> vector<8x128xf32>
    %c0_9 = arith.constant 0 : index
    %c0_10 = arith.constant 0 : index
    %11 = vector.load %arg5[%c0_9, %c0_10] : memref<1x128xf32, #tpu.memory_space<vmem>>, vector<1x128xf32>
    %12 = vector.broadcast %11 : vector<1x128xf32> to vector<8x128xf32>
    %13 = arith.addf %10, %12 : vector<8x128xf32>
    %14 = arith.negf %13 : vector<8x128xf32>
    %15 = math.exp %14 : vector<8x128xf32>
    %cst_11 = arith.constant 1.000000e+00 : f32
    %16 = vector.broadcast %cst_11 : f32 to vector<8x128xf32>
    %17 = arith.addf %16, %15 : vector<8x128xf32>
    %18 = arith.divf %16, %17 : vector<8x128xf32>
    %c0_12 = arith.constant 0 : index
    %c0_13 = arith.constant 0 : index
    %19 = vector.load %arg6[%c0_12, %c0_13] : memref<8x128xf32, #tpu.memory_space<vmem>>, vector<8x128xf32>
    tpu.vector_store %arg6[%c0_12, %c0_13], %18 {strides = array<i32>} : memref<8x128xf32, #tpu.memory_space<vmem>>, vector<8x128xf32>,
    return
  }
  func.func @transform_0(%arg0: i32) -> (i32, i32) {
    %c0_i32 = arith.constant 0 : i32
    %c0_i32_0 = arith.constant 0 : i32
    return %arg0, %c0_i32 : i32, i32
  }
  func.func @transform_1(%arg0: i32) -> (i32, i32) {
    %c0_i32 = arith.constant 0 : i32
    %c0_i32_0 = arith.constant 0 : i32
    %c0_i32_1 = arith.constant 0 : i32
    return %c0_i32, %c0_i32_0 : i32, i32
  }
  func.func @transform_2(%arg0: i32) -> (i32, i32) {
    %c0_i32 = arith.constant 0 : i32
    %c0_i32_0 = arith.constant 0 : i32
    %c0_i32_1 = arith.constant 0 : i32
    return %c0_i32, %c0_i32_0 : i32, i32
  }
  func.func @transform_3(%arg0: i32) -> (i32, i32) {
    %c0_i32 = arith.constant 0 : i32
    %c0_i32_0 = arith.constant 0 : i32
    %c0_i32_1 = arith.constant 0 : i32
    return %c0_i32, %c0_i32_0 : i32, i32
  }
  func.func @transform_4(%arg0: i32) -> (i32, i32) {
    %c0_i32 = arith.constant 0 : i32
    %c0_i32_0 = arith.constant 0 : i32
    %c0_i32_1 = arith.constant 0 : i32
    return %c0_i32, %c0_i32_0 : i32, i32
  }
  func.func @transform_5(%arg0: i32) -> (i32, i32) {
    %c0_i32 = arith.constant 0 : i32
    %c0_i32_0 = arith.constant 0 : i32
    return %arg0, %c0_i32 : i32, i32
  }
}

</mosaic_0001>

<bundles_post_ra>
// kernel: tpu_custom_call.1
= control target key start
LH: loop header
LB: loop body
LE: loop exit
PB: predicated region body
PF: predicated region fallthrough
CT: control target
= control target key end

     0   :  { %10 = vsyncpa [#allocation3], 0  ;;  %s606_s0 = inlined_call_operand.hbm [shape: bf16[8,128], index: 0, kind: input, shape index: {}]   ;;  %s607_s1 = inlined_call_operand.hbm [shape: bf16[128,128], index: 1, kind: input, shape index: {}]   ;;  %s608_s2 = inlined_call_operand.vmem [shape: f32[1,128], index: 2, kind: input, shape index: {}]   ;;  %s609_s3 = inlined_call_operand.hbm [shape: bf16[128,128], index: 3, kind: input, shape index: {}]   ;;  %s610_s4 = inlined_call_operand.vmem [shape: f32[1,128], index: 4, kind: input, shape index: {}]   ;;  %s611_s5 = inlined_call_operand.hbm [shape: f32[8,128], index: 5, kind: output, shape index: {}]  }
   0x1   :  { %11 = vsyncpa [#allocation6], 0 }
   0x2   :  { %12 = vsyncpa [#allocation4], 0  ;;  %s508_s18 = smov [#allocation5]   ;;  %s414_s22 = scalar_lea.hbm %s607_s1, 1024 }
   0x3   :  { %s28_s19 = sshll.u32 %s508_s18, 4  ;;  %p415_p0 = scmp.ne.s32.totalorder %s607_s1, %s414_s22  ;;  %s29_s19 = int_to_ptr.vmem [resolvable:$true] %s28_s19 }
   0x4   :  { %p418_p1 = scmp.lt.u32.totalorder %s414_s22, %s607_s1 }
   0x6   :  { %p420_p2 = pnand %p418_p1, %p415_p0 }
   0x8   :  { %423 = shalt.err (!%p420_p2)
}
   0x9   :  { %s424_s27 = scalar_lea.vmem %s29_s19, 1024  ;;  %p429_p4 = scmp.lt.s32.totalorder %s29_s19, %s29_s19 }
   0xa   :  { %p425_p3 = scmp.ne.s32.totalorder %s29_s19, %s424_s27  ;;  %p430_p5 = scmp.lt.s32.totalorder %s424_s27, %s424_s27 }
   0xc   :  { %p431_p6 = por %p430_p5, %p429_p4 }
   0xe   :  { %p432_p7 = pnand %p431_p6, %p425_p3 }
  0x10   :  { %435 = shalt.err (!%p432_p7)
}
  0x11   :  { %s509_s28 = smov 64   ;;  %s510_s29 = smov 4  }
  0x12   :  { %34 = dma.hbm_to_vmem [thread:$0]  %s607_s1, 1024, %s29_s19, [#allocation6], %s509_s28, %s509_s28, %s510_s29  }
  0x13   :  { %s511_s7 = smov [#allocation2]   ;;  %s512_s9 = smov [#allocation7]  }
  0x14   :  { %s19_s8 = sshll.u32 %s511_s7, 4  ;;  %s42_s10 = sshll.u32 %s512_s9, 4  ;;  %s20_s8 = int_to_ptr.vmem [resolvable:$true] %s19_s8  ;;  %s43_s10 = int_to_ptr.vmem [resolvable:$true] %s42_s10 }
  0x15   :  { %s436_s13 = scalar_lea.hbm %s606_s0, 64 }
  0x16   :  { %p437_p8 = scmp.ne.s32.totalorder %s606_s0, %s436_s13  ;;  %p440_p9 = scmp.lt.u32.totalorder %s436_s13, %s606_s0 }
  0x18   :  { %p442_p10 = pnand %p440_p9, %p437_p8 }
  0x1a   :  { %445 = shalt.err (!%p442_p10)
}
  0x1b   :  { %s446_s1 = scalar_lea.vmem %s20_s8, 64  ;;  %p451_p12 = scmp.lt.s32.totalorder %s20_s8, %s20_s8 }
  0x1c   :  { %p447_p11 = scmp.ne.s32.totalorder %s20_s8, %s446_s1  ;;  %p452_p13 = scmp.lt.s32.totalorder %s446_s1, %s446_s1 }
  0x1e   :  { %p453_p0 = por %p452_p13, %p451_p12 }
  0x20   :  { %p454_p1 = pnand %p453_p0, %p447_p11 }
  0x22   :  { %457 = shalt.err (!%p454_p1)
}
  0x23   :  { %22 = dma.hbm_to_vmem [thread:$0]  %s606_s0, 64, %s20_s8, [#allocation3]  }
  0x24   :  { %s458_s22 = scalar_lea.hbm %s609_s3, 1024 }
  0x25   :  { %p459_p2 = scmp.ne.s32.totalorder %s609_s3, %s458_s22  ;;  %p462_p3 = scmp.lt.u32.totalorder %s458_s22, %s609_s3 }
  0x27   :  { %p464_p4 = pnand %p462_p3, %p459_p2 }
  0x29   :  { %467 = shalt.err (!%p464_p4)
}
  0x2a   :  { %s468_s27 = scalar_lea.vmem %s43_s10, 1024  ;;  %p473_p6 = scmp.lt.s32.totalorder %s43_s10, %s43_s10 }
  0x2b   :  { %p469_p5 = scmp.ne.s32.totalorder %s43_s10, %s468_s27  ;;  %p474_p7 = scmp.lt.s32.totalorder %s468_s27, %s468_s27 }
  0x2d   :  { %p475_p8 = por %p474_p7, %p473_p6 }
  0x2f   :  { %p476_p9 = pnand %p475_p8, %p469_p5 }
  0x31   :  { %479 = shalt.err (!%p476_p9)
}
  0x32   :  { %48 = dma.hbm_to_vmem [thread:$0]  %s609_s3, 1024, %s43_s10, [#allocation6], %s509_s28, %s509_s28, %s510_s29  }
  0x33   :  { %502 = dma.done.wait [#allocation3], 64  }
  0x34   :  { %503 = vsyncadd [#allocation3], 4294967232 }
  0x35   :  { %504 = dma.done.wait [#allocation6], 2048  }
  0x36   :  { %505 = vsyncadd [#allocation6], 4294965248  ;;  %v513_v0 = vmov 0.0   ;;  %vm514_vm0 = vmmov 0   ;;  %v394_v1 = vld [vmem:[#allocation5] sm:$0xff]   ;;  %v395_v2 = vld [vmem:[#allocation5 + $0x8] sm:$0xff]  }
  0x37   :  { %346 = vmatprep.subr.bf16.mxu0 %v513_v0  ;;  %362 = vmatprep.mubr.msk.bf16.mxu0 %vm514_vm0, %v513_v0  ;;  %v396_v3 = vld [vmem:[#allocation5 + $0x10] sm:$0xff]   ;;  %v402_v4 = vld [vmem:[#allocation7] sm:$0xff]   ;;  %v397_v5 = vld [vmem:[#allocation5 + $0x18] sm:$0xff]  }
  0x38   :  { %366 = vmatprep.subr.bf16.mxu1 %v513_v0  ;;  %382 = vmatprep.mubr.msk.bf16.mxu1 %vm514_vm0, %v513_v0  ;;  %v403_v6 = vld [vmem:[#allocation7 + $0x8] sm:$0xff]   ;;  %v398_v7 = vld [vmem:[#allocation5 + $0x20] sm:$0xff]   ;;  %v404_v8 = vld [vmem:[#allocation7 + $0x10] sm:$0xff]  }
  0x39   :  { %347 = vmatpush3.bf16.msra.mxu0 %v394_v1  ;;  %367 = vmatpush3.bf16.msra.mxu1 %v402_v4  ;;  %v399_v9 = vld [vmem:[#allocation5 + $0x28] sm:$0xff]   ;;  %v405_v10 = vld [vmem:[#allocation7 + $0x18] sm:$0xff]   ;;  %v400_v11 = vld [vmem:[#allocation5 + $0x30] sm:$0xff]  }
  0x3a   :  { %348 = vmatprep.subr.bf16.mxu0 %v513_v0  ;;  %368 = vmatprep.subr.bf16.mxu1 %v513_v0  ;;  %v406_v12 = vld [vmem:[#allocation7 + $0x20] sm:$0xff]   ;;  %v401_v13 = vld [vmem:[#allocation5 + $0x38] sm:$0xff]   ;;  %v407_v14 = vld [vmem:[#allocation7 + $0x28] sm:$0xff]  }
  0x3b   :  { %v61_v15 = vld [vmem:[#allocation2] sm:$0xf]  ;;  %v408_v16 = vld [vmem:[#allocation7 + $0x30] sm:$0xff]  }
  0x3c   :  { %v409_v17 = vld [vmem:[#allocation7 + $0x38] sm:$0xff]  }
  0x3d   :  { %349 = vmatpush3.bf16.msra.mxu0 %v395_v2  ;;  %369 = vmatpush3.bf16.msra.mxu1 %v403_v6  ;;  %v309_v18 = vld [vmem:[%s608_s2] ss:$0 sm:$0xff]  ;;  %s515_s2 = smov [#allocation8]  }
  0x3e   :  { %350 = vmatprep.subr.bf16.mxu0 %v513_v0  ;;  %370 = vmatprep.subr.bf16.mxu1 %v513_v0  ;;  %v318_v26 = vld [vmem:[%s610_s4] ss:$0 sm:$0xff]  ;;  %s299_s7 = sshll.u32 %s515_s2, 4  ;;  %s300_s7 = int_to_ptr.vmem [resolvable:$true] %s299_s7 }
  0x3f   :  { %s480_s8 = scalar_lea.vmem %s300_s7, 128  ;;  %p485_p11 = scmp.lt.s32.totalorder %s300_s7, %s300_s7 }
  0x40   :  { %p481_p10 = scmp.ne.s32.totalorder %s300_s7, %s480_s8  ;;  %p486_p12 = scmp.lt.s32.totalorder %s480_s8, %s480_s8 }
  0x41   :  { %351 = vmatpush3.bf16.msra.mxu0 %v396_v3  ;;  %371 = vmatpush3.bf16.msra.mxu1 %v404_v8 }
  0x42   :  { %352 = vmatprep.subr.bf16.mxu0 %v513_v0  ;;  %372 = vmatprep.subr.bf16.mxu1 %v513_v0  ;;  %p487_p13 = por %p486_p12, %p485_p11 }
  0x44   :  { %p488_p0 = pnand %p487_p13, %p481_p10 }
  0x45   :  { %353 = vmatpush3.bf16.msra.mxu0 %v397_v5  ;;  %373 = vmatpush3.bf16.msra.mxu1 %v405_v10 }
  0x46   :  { %354 = vmatprep.subr.bf16.mxu0 %v513_v0  ;;  %374 = vmatprep.subr.bf16.mxu1 %v513_v0 }
  0x49   :  { %355 = vmatpush3.bf16.msra.mxu0 %v398_v7  ;;  %375 = vmatpush3.bf16.msra.mxu1 %v406_v12 }
  0x4a   :  { %356 = vmatprep.subr.bf16.mxu0 %v513_v0  ;;  %376 = vmatprep.subr.bf16.mxu1 %v513_v0 }
  0x4d   :  { %357 = vmatpush3.bf16.msra.mxu0 %v399_v9  ;;  %377 = vmatpush3.bf16.msra.mxu1 %v407_v14 }
  0x4e   :  { %358 = vmatprep.subr.bf16.mxu0 %v513_v0  ;;  %378 = vmatprep.subr.bf16.mxu1 %v513_v0 }
  0x51   :  { %359 = vmatpush3.bf16.msra.mxu0 %v400_v11  ;;  %379 = vmatpush3.bf16.msra.mxu1 %v408_v16 }
  0x52   :  { %360 = vmatprep.subr.bf16.mxu0 %v513_v0  ;;  %380 = vmatprep.subr.bf16.mxu1 %v513_v0 }
  0x55   :  { %361 = vmatpush3.bf16.msra.mxu0 %v401_v13  ;;  %381 = vmatpush3.bf16.msra.mxu1 %v409_v17 }
  0x58   :  { %363 = vmatmul.mubr.bf16.vlgmr.msra.gmra.mrb[0].mxu0 %v61_v15 }
 0x12b   :  { %v167_v19 = vpop.f32.mrb[0].mxu0 }
 0x12c   :  { %v168_v20 = vadd.f32 %v309_v18, %v167_v19  ;;  %v364_v21 = vpop.f32.mrb[1].mxu0 }
 0x12d   :  { %v170_v22 = vpop.f32.mrb[2].mxu0 }
 0x12e   :  { %v173_v23 = vmax.f32 %v168_v20, 0.0  ;;  %v365_v24 = vpop.f32.mrb[3].mxu0 }
 0x130   :  { %v174_v25 = vpack.c.bf16 %v173_v23, %v173_v23 }
 0x132   :  { %383 = vmatmul.mubr.bf16.vlgmr.msra.gmra.mrb[0].mxu1 %v174_v25 }
 0x205   :  { %v280_v27 = vpop.f32.mrb[0].mxu1 }
 0x206   :  { %v281_v28 = vadd.f32 %v318_v26, %v280_v27  ;;  %v384_v29 = vpop.f32.mrb[1].mxu1 }
 0x207   :  { %v283_v30 = vpop.f32.mrb[2].mxu1 }
 0x208   :  { %v327_v31 = vmul.f32 -1.442695, %v281_v28  ;;  %v385_v32 = vpop.f32.mrb[3].mxu1 }
 0x20a   :  { %410 = vpow2.f32 %v327_v31 }
 0x214   :  { %v411_v33 = vpop.eup %410 }
 0x215   :  { %v289_v34 = vadd.f32 1.0, %v411_v33 }
 0x217   :  { %412 = vrcp.f32 %v289_v34 }
 0x221   :  { %v413_v35 = vpop.eup %412 }
 0x222   :  { %292 = vst [vmem:[#allocation8] sm:$0xff] %v413_v35 }
 0x223   :  { %491 = shalt.err (!%p488_p0)
}
 0x224   :  { %s492_s10 = scalar_lea.hbm %s611_s5, 128 }
 0x225   :  { %p493_p1 = scmp.ne.s32.totalorder %s611_s5, %s492_s10  ;;  %p496_p2 = scmp.lt.u32.totalorder %s492_s10, %s611_s5 }
 0x227   :  { %p498_p3 = pnand %p496_p2, %p493_p1 }
 0x229   :  { %501 = shalt.err (!%p498_p3)
}
 0x22a   :  { %302 = dma.vmem_to_hbm [thread:$0]  %s300_s7, 128, %s611_s5, [#allocation4]  }
 0x22b   :  { %506 = dma.done.wait [#allocation4], 128  }
 0x22c   :  { %507 = vsyncadd [#allocation4], 4294967168 }
 0x22d   :  { %306 = vsyncpa [#allocation3], 1 }
 0x22e   :  { %307 = vsyncpa [#allocation6], 1 }
 0x22f   :  { %308 = vsyncpa [#allocation4], 1 }

// kernel: tpu_custom_call.1
= control target key start
LH: loop header
LB: loop body
LE: loop exit
PB: predicated region body
PF: predicated region fallthrough
CT: control target
= control target key end

     0   :  { %10 = vsyncpa [#allocation3], 0  ;;  %s606_s0 = inlined_call_operand.hbm [shape: bf16[8,128], index: 0, kind: input, shape index: {}]   ;;  %s607_s1 = inlined_call_operand.hbm [shape: bf16[128,128], index: 1, kind: input, shape index: {}]   ;;  %s608_s2 = inlined_call_operand.vmem [shape: f32[1,128], index: 2, kind: input, shape index: {}]   ;;  %s609_s3 = inlined_call_operand.hbm [shape: bf16[128,128], index: 3, kind: input, shape index: {}]   ;;  %s610_s4 = inlined_call_operand.vmem [shape: f32[1,128], index: 4, kind: input, shape index: {}]   ;;  %s611_s5 = inlined_call_operand.hbm [shape: f32[8,128], index: 5, kind: output, shape index: {}]  }
   0x1   :  { %11 = vsyncpa [#allocation6], 0 }
   0x2   :  { %12 = vsyncpa [#allocation4], 0  ;;  %s508_s18 = smov [#allocation5]   ;;  %s414_s22 = scalar_lea.hbm %s607_s1, 1024 }
   0x3   :  { %s28_s19 = sshll.u32 %s508_s18, 4  ;;  %p415_p0 = scmp.ne.s32.totalorder %s607_s1, %s414_s22  ;;  %s29_s19 = int_to_ptr.vmem [resolvable:$true] %s28_s19 }
   0x4   :  { %p418_p1 = scmp.lt.u32.totalorder %s414_s22, %s607_s1 }
   0x6   :  { %p420_p2 = pnand %p418_p1, %p415_p0 }
   0x8   :  { %423 = shalt.err (!%p420_p2)
}
   0x9   :  { %s424_s27 = scalar_lea.vmem %s29_s19, 1024  ;;  %p429_p4 = scmp.lt.s32.totalorder %s29_s19, %s29_s19 }
   0xa   :  { %p425_p3 = scmp.ne.s32.totalorder %s29_s19, %s424_s27  ;;  %p430_p5 = scmp.lt.s32.totalorder %s424_s27, %s424_s27 }
   0xc   :  { %p431_p6 = por %p430_p5, %p429_p4 }
   0xe   :  { %p432_p7 = pnand %p431_p6, %p425_p3 }
  0x10   :  { %435 = shalt.err (!%p432_p7)
}
  0x11   :  { %s509_s28 = smov 64   ;;  %s510_s29 = smov 4  }
  0x12   :  { %34 = dma.hbm_to_vmem [thread:$0]  %s607_s1, 1024, %s29_s19, [#allocation6], %s509_s28, %s509_s28, %s510_s29  }
  0x13   :  { %s511_s7 = smov [#allocation2]   ;;  %s512_s9 = smov [#allocation7]  }
  0x14   :  { %s19_s8 = sshll.u32 %s511_s7, 4  ;;  %s42_s10 = sshll.u32 %s512_s9, 4  ;;  %s20_s8 = int_to_ptr.vmem [resolvable:$true] %s19_s8  ;;  %s43_s10 = int_to_ptr.vmem [resolvable:$true] %s42_s10 }
  0x15   :  { %s436_s13 = scalar_lea.hbm %s606_s0, 64 }
  0x16   :  { %p437_p8 = scmp.ne.s32.totalorder %s606_s0, %s436_s13  ;;  %p440_p9 = scmp.lt.u32.totalorder %s436_s13, %s606_s0 }
  0x18   :  { %p442_p10 = pnand %p440_p9, %p437_p8 }
  0x1a   :  { %445 = shalt.err (!%p442_p10)
}
  0x1b   :  { %s446_s1 = scalar_lea.vmem %s20_s8, 64  ;;  %p451_p12 = scmp.lt.s32.totalorder %s20_s8, %s20_s8 }
  0x1c   :  { %p447_p11 = scmp.ne.s32.totalorder %s20_s8, %s446_s1  ;;  %p452_p13 = scmp.lt.s32.totalorder %s446_s1, %s446_s1 }
  0x1e   :  { %p453_p0 = por %p452_p13, %p451_p12 }
  0x20   :  { %p454_p1 = pnand %p453_p0, %p447_p11 }
  0x22   :  { %457 = shalt.err (!%p454_p1)
}
  0x23   :  { %22 = dma.hbm_to_vmem [thread:$0]  %s606_s0, 64, %s20_s8, [#allocation3]  }
  0x24   :  { %s458_s22 = scalar_lea.hbm %s609_s3, 1024 }
  0x25   :  { %p459_p2 = scmp.ne.s32.totalorder %s609_s3, %s458_s22  ;;  %p462_p3 = scmp.lt.u32.totalorder %s458_s22, %s609_s3 }
  0x27   :  { %p464_p4 = pnand %p462_p3, %p459_p2 }
  0x29   :  { %467 = shalt.err (!%p464_p4)
}
  0x2a   :  { %s468_s27 = scalar_lea.vmem %s43_s10, 1024  ;;  %p473_p6 = scmp.lt.s32.totalorder %s43_s10, %s43_s10 }
  0x2b   :  { %p469_p5 = scmp.ne.s32.totalorder %s43_s10, %s468_s27  ;;  %p474_p7 = scmp.lt.s32.totalorder %s468_s27, %s468_s27 }
  0x2d   :  { %p475_p8 = por %p474_p7, %p473_p6 }
  0x2f   :  { %p476_p9 = pnand %p475_p8, %p469_p5 }
  0x31   :  { %479 = shalt.err (!%p476_p9)
}
  0x32   :  { %48 = dma.hbm_to_vmem [thread:$0]  %s609_s3, 1024, %s43_s10, [#allocation6], %s509_s28, %s509_s28, %s510_s29  }
  0x33   :  { %502 = dma.done.wait [#allocation3], 64  }
  0x34   :  { %503 = vsyncadd [#allocation3], 4294967232 }
  0x35   :  { %504 = dma.done.wait [#allocation6], 2048  }
  0x36   :  { %505 = vsyncadd [#allocation6], 4294965248  ;;  %v513_v0 = vmov 0.0   ;;  %vm514_vm0 = vmmov 0   ;;  %v394_v1 = vld [vmem:[#allocation5] sm:$0xff]   ;;  %v395_v2 = vld [vmem:[#allocation5 + $0x8] sm:$0xff]  }
  0x37   :  { %346 = vmatprep.subr.bf16.mxu0 %v513_v0  ;;  %362 = vmatprep.mubr.msk.bf16.mxu0 %vm514_vm0, %v513_v0  ;;  %v396_v3 = vld [vmem:[#allocation5 + $0x10] sm:$0xff]   ;;  %v402_v4 = vld [vmem:[#allocation7] sm:$0xff]   ;;  %v397_v5 = vld [vmem:[#allocation5 + $0x18] sm:$0xff]  }
  0x38   :  { %366 = vmatprep.subr.bf16.mxu1 %v513_v0  ;;  %382 = vmatprep.mubr.msk.bf16.mxu1 %vm514_vm0, %v513_v0  ;;  %v403_v6 = vld [vmem:[#allocation7 + $0x8] sm:$0xff]   ;;  %v398_v7 = vld [vmem:[#allocation5 + $0x20] sm:$0xff]   ;;  %v404_v8 = vld [vmem:[#allocation7 + $0x10] sm:$0xff]  }
  0x39   :  { %347 = vmatpush3.bf16.msra.mxu0 %v394_v1  ;;  %367 = vmatpush3.bf16.msra.mxu1 %v402_v4  ;;  %v399_v9 = vld [vmem:[#allocation5 + $0x28] sm:$0xff]   ;;  %v405_v10 = vld [vmem:[#allocation7 + $0x18] sm:$0xff]   ;;  %v400_v11 = vld [vmem:[#allocation5 + $0x30] sm:$0xff]  }
  0x3a   :  { %348 = vmatprep.subr.bf16.mxu0 %v513_v0  ;;  %368 = vmatprep.subr.bf16.mxu1 %v513_v0  ;;  %v406_v12 = vld [vmem:[#allocation7 + $0x20] sm:$0xff]   ;;  %v401_v13 = vld [vmem:[#allocation5 + $0x38] sm:$0xff]   ;;  %v407_v14 = vld [vmem:[#allocation7 + $0x28] sm:$0xff]  }
  0x3b   :  { %v61_v15 = vld [vmem:[#allocation2] sm:$0xf]  ;;  %v408_v16 = vld [vmem:[#allocation7 + $0x30] sm:$0xff]  }
  0x3c   :  { %v409_v17 = vld [vmem:[#allocation7 + $0x38] sm:$0xff]  }
  0x3d   :  { %349 = vmatpush3.bf16.msra.mxu0 %v395_v2  ;;  %369 = vmatpush3.bf16.msra.mxu1 %v403_v6  ;;  %v309_v18 = vld [vmem:[%s608_s2] ss:$0 sm:$0xff]  ;;  %s515_s2 = smov [#allocation8]  }
  0x3e   :  { %350 = vmatprep.subr.bf16.mxu0 %v513_v0  ;;  %370 = vmatprep.subr.bf16.mxu1 %v513_v0  ;;  %v318_v26 = vld [vmem:[%s610_s4] ss:$0 sm:$0xff]  ;;  %s299_s7 = sshll.u32 %s515_s2, 4  ;;  %s300_s7 = int_to_ptr.vmem [resolvable:$true] %s299_s7 }
  0x3f   :  { %s480_s8 = scalar_lea.vmem %s300_s7, 128  ;;  %p485_p11 = scmp.lt.s32.totalorder %s300_s7, %s300_s7 }
  0x40   :  { %p481_p10 = scmp.ne.s32.totalorder %s300_s7, %s480_s8  ;;  %p486_p12 = scmp.lt.s32.totalorder %s480_s8, %s480_s8 }
  0x41   :  { %351 = vmatpush3.bf16.msra.mxu0 %v396_v3  ;;  %371 = vmatpush3.bf16.msra.mxu1 %v404_v8 }
  0x42   :  { %352 = vmatprep.subr.bf16.mxu0 %v513_v0  ;;  %372 = vmatprep.subr.bf16.mxu1 %v513_v0  ;;  %p487_p13 = por %p486_p12, %p485_p11 }
  0x44   :  { %p488_p0 = pnand %p487_p13, %p481_p10 }
  0x45   :  { %353 = vmatpush3.bf16.msra.mxu0 %v397_v5  ;;  %373 = vmatpush3.bf16.msra.mxu1 %v405_v10 }
  0x46   :  { %354 = vmatprep.subr.bf16.mxu0 %v513_v0  ;;  %374 = vmatprep.subr.bf16.mxu1 %v513_v0 }
  0x49   :  { %355 = vmatpush3.bf16.msra.mxu0 %v398_v7  ;;  %375 = vmatpush3.bf16.msra.mxu1 %v406_v12 }
  0x4a   :  { %356 = vmatprep.subr.bf16.mxu0 %v513_v0  ;;  %376 = vmatprep.subr.bf16.mxu1 %v513_v0 }
  0x4d   :  { %357 = vmatpush3.bf16.msra.mxu0 %v399_v9  ;;  %377 = vmatpush3.bf16.msra.mxu1 %v407_v14 }
  0x4e   :  { %358 = vmatprep.subr.bf16.mxu0 %v513_v0  ;;  %378 = vmatprep.subr.bf16.mxu1 %v513_v0 }
  0x51   :  { %359 = vmatpush3.bf16.msra.mxu0 %v400_v11  ;;  %379 = vmatpush3.bf16.msra.mxu1 %v408_v16 }
  0x52   :  { %360 = vmatprep.subr.bf16.mxu0 %v513_v0  ;;  %380 = vmatprep.subr.bf16.mxu1 %v513_v0 }
  0x55   :  { %361 = vmatpush3.bf16.msra.mxu0 %v401_v13  ;;  %381 = vmatpush3.bf16.msra.mxu1 %v409_v17 }
  0x58   :  { %363 = vmatmul.mubr.bf16.vlgmr.msra.gmra.mrb[0].mxu0 %v61_v15 }
 0x12b   :  { %v167_v19 = vpop.f32.mrb[0].mxu0 }
 0x12c   :  { %v168_v20 = vadd.f32 %v309_v18, %v167_v19  ;;  %v364_v21 = vpop.f32.mrb[1].mxu0 }
 0x12d   :  { %v170_v22 = vpop.f32.mrb[2].mxu0 }
 0x12e   :  { %v173_v23 = vmax.f32 %v168_v20, 0.0  ;;  %v365_v24 = vpop.f32.mrb[3].mxu0 }
 0x130   :  { %v174_v25 = vpack.c.bf16 %v173_v23, %v173_v23 }
 0x132   :  { %383 = vmatmul.mubr.bf16.vlgmr.msra.gmra.mrb[0].mxu1 %v174_v25 }
 0x205   :  { %v280_v27 = vpop.f32.mrb[0].mxu1 }
 0x206   :  { %v281_v28 = vadd.f32 %v318_v26, %v280_v27  ;;  %v384_v29 = vpop.f32.mrb[1].mxu1 }
 0x207   :  { %v283_v30 = vpop.f32.mrb[2].mxu1 }
 0x208   :  { %v327_v31 = vmul.f32 -1.442695, %v281_v28  ;;  %v385_v32 = vpop.f32.mrb[3].mxu1 }
 0x20a   :  { %410 = vpow2.f32 %v327_v31 }
 0x214   :  { %v411_v33 = vpop.eup %410 }
 0x215   :  { %v289_v34 = vadd.f32 1.0, %v411_v33 }
 0x217   :  { %412 = vrcp.f32 %v289_v34 }
 0x221   :  { %v413_v35 = vpop.eup %412 }
 0x222   :  { %292 = vst [vmem:[#allocation8] sm:$0xff] %v413_v35 }
 0x223   :  { %491 = shalt.err (!%p488_p0)
}
 0x224   :  { %s492_s10 = scalar_lea.hbm %s611_s5, 128 }
 0x225   :  { %p493_p1 = scmp.ne.s32.totalorder %s611_s5, %s492_s10  ;;  %p496_p2 = scmp.lt.u32.totalorder %s492_s10, %s611_s5 }
 0x227   :  { %p498_p3 = pnand %p496_p2, %p493_p1 }
 0x229   :  { %501 = shalt.err (!%p498_p3)
}
 0x22a   :  { %302 = dma.vmem_to_hbm [thread:$0]  %s300_s7, 128, %s611_s5, [#allocation4]  }
 0x22b   :  { %506 = dma.done.wait [#allocation4], 128  }
 0x22c   :  { %507 = vsyncadd [#allocation4], 4294967168 }
 0x22d   :  { %306 = vsyncpa [#allocation3], 1 }
 0x22e   :  { %307 = vsyncpa [#allocation6], 1 }
 0x22f   :  { %308 = vsyncpa [#allocation4], 1 }

</bundles_post_ra>
